<compile_context>
chip_gen: v6e
topology: v6e:2x2x1
jax: 0.10.0
libtpu: 0.0.40
codegen_flags: <defaults>
</compile_context>

<pallas_src>
import functools

import jax
import jax.numpy as jnp
from jax.experimental import pallas as pl
from jax.experimental.pallas import tpu as pltpu


# ----------------------------------------------------------------------------
# VMEM budgeting (per-generation)
# ----------------------------------------------------------------------------
@functools.lru_cache(maxsize=None)
def _vmem_limit_bytes():
    """Scoped-VMEM limit: 75% of physical VMEM, capped at 112 MiB.

    v5e/v6e: 128 MiB physical -> 96 MiB scoped.  v7x: 64 MiB physical -> 48 MiB scoped.
    Falls back to a conservative 48 MiB if the query is unavailable.
    """
    cap = 64 * 1024 * 1024
    try:
        info = pltpu.get_tpu_info()
        cap = int(getattr(info, "vmem_capacity_bytes", cap))
    except Exception:
        pass
    return int(min(int(cap * 0.75), 112 * 1024 * 1024))


def _pack_group(d_model):
    """# of consecutive segments packed per kernel row so the output is 128-lane dense."""
    if d_model < 128 and 128 % d_model == 0:
        return 128 // d_model
    return 1


# ----------------------------------------------------------------------------
# Pallas kernel: fused LayerNorm(K) per group + one block-diagonal GEMM (G*K -> G*D)
# ----------------------------------------------------------------------------
def _fused_ln_linear_kernel(x_ref, gamma_ref, beta_ref, w_ref, bias_ref, o_ref,
                            *, group, feat, total_rows, block_rows, mask_tail):
    # x_ref:    (block_rows, group*feat)        bf16
    # gamma/beta: (1, feat)                     f32
    # w_ref:    (group*feat, group*out_dim)     bf16 block-diagonal (resident)
    # bias_ref: (1, group*out_dim)              f32
    # o_ref:    (block_rows, group*out_dim)     bf16
    x = x_ref[...].astype(jnp.float32)

    if mask_tail:
        # Hoisted: one broadcast + one select for the whole tile.
        r0 = pl.program_id(0) * block_rows
        ridx = r0 + jax.lax.broadcasted_iota(jnp.int32, (block_rows, 1), 0)
        x = jnp.where(ridx < total_rows, x, 0.0)

    gamma = gamma_ref[...]
    beta = beta_ref[...]
    inv_k = 1.0 / float(feat)

    # Per-group LayerNorm (f32, two-pass centered variance); group is small
    # (1 when d_model >= 128, 128 // d_model otherwise).
    parts = []
    for g in range(group):
        xg = x[:, g * feat:(g + 1) * feat]
        mean = jnp.sum(xg, axis=-1, keepdims=True) * inv_k
        cent = xg - mean
        var = jnp.sum(cent * cent, axis=-1, keepdims=True) * inv_k
        inv_std = jax.lax.rsqrt(var + 1e-5)            # eps matches PyTorch default
        parts.append(cent * inv_std * gamma + beta)
    y = parts[0] if group == 1 else jnp.concatenate(parts, axis=-1)

    # Single MXU matmul against the block-diagonal bf16 weight; f32 accumulation;
    # one lane-dense (block_rows, group*out_dim) store.
    acc = jnp.dot(y.astype(jnp.bfloat16), w_ref[...],
                  preferred_element_type=jnp.float32)
    o_ref[...] = (acc + bias_ref[...]).astype(o_ref.dtype)


def _fused_layernorm_linear(x2d, gamma, beta, w_bd_bf16, bias_tiled, *,
                            feat, out_dim, group):
    """x2d: (M, K) -> (M, out_dim) via fused LayerNorm + Linear (bf16 I/O, f32 math)."""
    M, K = x2d.shape
    assert K == feat
    G, D = group, out_dim
    GK, GD = G * K, G * D

    # bf16 activations on the wire (mem-bound kernel); pad rows to a multiple of G so
    # the packed output last dim is always G*D (a multiple of 128 when D packs).
    x2d = x2d.astype(jnp.bfloat16)
    Mp = ((M + G - 1) // G) * G
    if Mp != M:
        x2d = jnp.pad(x2d, ((0, Mp - M), (0, 0)))
    M2 = Mp // G
    x_dense = x2d.reshape(M2, GK)                       # metadata-only reshape

    # Row-tile sizing from the per-generation VMEM budget.
    limit = _vmem_limit_bytes()
    budget = int(limit * 0.7)
    fixed = GK * GD * 2 + (2 * K) * 4 + GD * 4          # resident weights / params
    per_row = 2 * 2 * GK + 2 * 2 * GD + 4 * (2 * GK + GD)  # dbl-buffered bf16 I/O + f32 temps
    max_rows = max(8, (budget - fixed) // per_row)
    block_rows = min(2048, int(max_rows))
    block_rows = max(8, (block_rows // 8) * 8)
    if block_rows >= M2:
        if M2 >= 64:
            # Keep >= 2 grid steps so v7x's two TensorCores both get work.
            half = ((((M2 + 1) // 2) + 7) // 8) * 8
            block_rows = min(block_rows, half)
        else:
            block_rows = M2                             # single block, full-extent dims
    grid = (pl.cdiv(M2, block_rows),)
    mask_tail = (M2 % block_rows) != 0                  # no wrapper-side row padding copy

    kernel = functools.partial(
        _fused_ln_linear_kernel, group=G, feat=K,
        total_rows=M2, block_rows=block_rows, mask_tail=mask_tail)

    cost = pl.CostEstimate(
        flops=2 * M2 * GK * GD + 10 * M2 * GK,
        transcendentals=M2 * G,
        bytes_accessed=M2 * GK * 2 + M2 * GD * 2 + GK * GD * 2 + (2 * K + GD) * 4)

    out = pl.pallas_call(
        kernel,
        out_shape=jax.ShapeDtypeStruct((M2, GD), jnp.bfloat16),
        grid=grid,
        in_specs=[
            pl.BlockSpec((block_rows, GK), lambda i: (i, 0)),
            pl.BlockSpec((1, K), lambda i: (0, 0)),
            pl.BlockSpec((1, K), lambda i: (0, 0)),
            pl.BlockSpec((GK, GD), lambda i: (0, 0)),
            pl.BlockSpec((1, GD), lambda i: (0, 0)),
        ],
        out_specs=pl.BlockSpec((block_rows, GD), lambda i: (i, 0)),
        compiler_params=pltpu.CompilerParams(
            dimension_semantics=("parallel",),
            vmem_limit_bytes=limit),
        cost_estimate=cost,
    )(x_dense, gamma.reshape(1, K), beta.reshape(1, K),
      w_bd_bf16, bias_tiled.reshape(1, GD))

    out = out.reshape(Mp, D)
    if Mp != M:
        out = out[:M]
    return out


# ----------------------------------------------------------------------------
# SegMerging forward (glue reshapes in JAX, fused LN+Linear in Pallas)
# ----------------------------------------------------------------------------
def seg_merging_forward(x, params, win_size):
    """x: (B, ts_d, seg_num, d_model) -> (B, ts_d, ceil(seg_num/win), d_model)."""
    B, T, S, D = x.shape
    pad_num = S % win_size
    if pad_num != 0:
        pad_num = win_size - pad_num
        x = jnp.concatenate([x, x[:, :, -pad_num:, :]], axis=2)
    S2 = x.shape[2] // win_size
    K = win_size * D
    # torch.cat([x[:, :, i::win, :] for i in range(win)], -1) == reshape to (.., S2, win*D)
    x2d = x.reshape(B * T * S2, K)
    out = _fused_layernorm_linear(
        x2d, params["norm_gamma"], params["norm_beta"],
        params["lin_w_bd"], params["lin_b_tiled"],
        feat=K, out_dim=D, group=_pack_group(D))
    return out.reshape(B, T, S2, D)


# ----------------------------------------------------------------------------
# Encoder (deterministic parameter init, no checkpoint load)
# ----------------------------------------------------------------------------
def init_encoder_params(key, e_blocks, win_size, d_model):
    params = []
    G = _pack_group(d_model)
    for i in range(e_blocks):
        if i == 0:
            params.append(None)  # scale_block with win_size=1 has no merge layer
            continue
        k1, k2, key = jax.random.split(key, 3)
        K = win_size * d_model
        w = jax.random.normal(k1, (K, d_model), jnp.float32) * (1.0 / K ** 0.5)
        b = jax.random.normal(k2, (d_model,), jnp.float32) * 0.01
        # Pre-cast to bf16 and build the block-diagonal MXU weight once at init.
        w_bf = w.astype(jnp.bfloat16)
        w_bd = jnp.zeros((G * K, G * d_model), jnp.bfloat16)
        for g in range(G):
            w_bd = w_bd.at[g * K:(g + 1) * K, g * d_model:(g + 1) * d_model].set(w_bf)
        params.append({
            "norm_gamma": jnp.ones((K,), jnp.float32),
            "norm_beta": jnp.zeros((K,), jnp.float32),
            "lin_w": w,                         # f32 originals (reference / export)
            "lin_b": b,
            "lin_w_bd": w_bd,                   # bf16 block-diagonal MXU operand
            "lin_b_tiled": jnp.tile(b, G),      # f32, matches packed output lanes
        })
    return params


@functools.partial(jax.jit, static_argnums=(2,))
def encoder_forward(x, params, win_size):
    """Reproduces Encoder.forward: returns [x, block0(x), block1(...), ...]."""
    encode_x = [x]
    for blk_params in params:
        if blk_params is not None:              # SegMerging (win_size > 1)
            x = seg_merging_forward(x, blk_params, win_size)
        # TODO(synk): encode_layers (SUMformer_*_layer) are undefined in the reference -> identity.
        encode_x.append(x)
    return encode_x


# ----------------------------------------------------------------------------
# Main
# ----------------------------------------------------------------------------
if __name__ == "__main__":
    # Small, forward-consistent shapes.
    B, ts_d, in_seg_num, d_model = 2, 4, 8, 32
    e_blocks, win_size = 3, 2

    key = jax.random.PRNGKey(0)
    kx, kp = jax.random.split(key)
    x = jax.random.normal(kx, (B, ts_d, in_seg_num, d_model), jnp.float32)

    params = init_encoder_params(kp, e_blocks, win_size, d_model)

    outs = encoder_forward(x, params, win_size)
    outs = jax.block_until_ready(outs)

    # Pure-JAX f32 reference of SegMerging (matches the PyTorch module semantics).
    def ref_segmerge(xin, p, win):
        xin = xin.astype(jnp.float32)
        Bq, Tq, Sq, Dq = xin.shape
        pad = Sq % win
        if pad:
            xin = jnp.concatenate([xin, xin[:, :, -(win - pad):, :]], axis=2)
        S2 = xin.shape[2] // win
        xm = xin.reshape(Bq, Tq, S2, win * Dq)
        mu = xm.mean(-1, keepdims=True)
        var = ((xm - mu) ** 2).mean(-1, keepdims=True)
        xn = (xm - mu) / jnp.sqrt(var + 1e-5)
        y = xn * p["norm_gamma"] + p["norm_beta"]
        return y @ p["lin_w"] + p["lin_b"]

    # Tolerance accounts for bf16 activations + bf16 MXU operands (LN stats stay f32).
    ref1 = ref_segmerge(outs[1], params[1], win_size)
    ref2 = ref_segmerge(outs[2], params[2], win_size)
    assert jnp.allclose(ref1, outs[2].astype(jnp.float32), atol=5e-2, rtol=5e-2), \
        "block1 mismatch vs reference"
    assert jnp.allclose(ref2, outs[3].astype(jnp.float32), atol=5e-2, rtol=5e-2), \
        "block2 mismatch vs reference"

    # Expected shapes: x, block0 (identity), block1 (seg 8->4), block2 (seg 4->2)
    assert outs[0].shape == (B, ts_d, in_seg_num, d_model)
    assert outs[1].shape == (B, ts_d, in_seg_num, d_model)
    assert outs[2].shape == (B, ts_d, in_seg_num // win_size, d_model)
    assert outs[3].shape == (B, ts_d, in_seg_num // win_size ** 2, d_model)

    # Tail-mask / multi-step-grid path (M2 = 100 rows, 2 grid steps, masked tail block).
    pb = params[1]
    xb = jax.random.normal(jax.random.PRNGKey(1), (4, 10, 20, d_model), jnp.float32)
    got_b = jax.block_until_ready(seg_merging_forward(xb, pb, win_size))
    assert got_b.shape == (4, 10, 10, d_model)
    assert jnp.allclose(ref_segmerge(xb, pb, win_size), got_b.astype(jnp.float32),
                        atol=5e-2, rtol=5e-2), "tail-mask path mismatch vs reference"

    # Row-padding path (M = 9 rows, not a multiple of the lane-pack group G = 4).
    xc = jax.random.normal(jax.random.PRNGKey(3), (1, 3, 6, d_model), jnp.float32)
    got_c = jax.block_until_ready(seg_merging_forward(xc, pb, win_size))
    assert got_c.shape == (1, 3, 3, d_model)
    assert jnp.allclose(ref_segmerge(xc, pb, win_size), got_c.astype(jnp.float32),
                        atol=5e-2, rtol=5e-2), "row-padding path mismatch vs reference"

    print("KERNEL_OK")
</pallas_src>

<mosaic_0001>
module attributes {stable_mosaic.version = 11 : i64} {
  func.func @_fused_ln_linear_kernel(%arg0: i32, %arg1: memref<8x256xbf16, #tpu.memory_space<vmem>>, %arg2: memref<1x64xf32, #tpu.memory_space<vmem>>, %arg3: memref<1x64xf32, #tpu.memory_space<vmem>>, %arg4: memref<256x128xbf16, #tpu.memory_space<vmem>>, %arg5: memref<1x128xf32, #tpu.memory_space<vmem>>, %arg6: memref<8x128xbf16, #tpu.memory_space<vmem>>) attributes {dimension_semantics = [#tpu.dimension_semantics<parallel>], iteration_bounds = array<i64: 1>, scalar_prefetch = 0 : i64, scratch_operands = 0 : i64, tpu.core_type = #tpu.core_type<tc>, window_params = [{transform_indices = @transform_0, window_bounds = array<i64: 8, 256>}, {pipeline_mode = #tpu.pipeline_mode<synchronous>, transform_indices = @transform_1, window_bounds = array<i64: 1, 64>}, {pipeline_mode = #tpu.pipeline_mode<synchronous>, transform_indices = @transform_2, window_bounds = array<i64: 1, 64>}, {pipeline_mode = #tpu.pipeline_mode<synchronous>, transform_indices = @transform_3, window_bounds = array<i64: 256, 128>}, {pipeline_mode = #tpu.pipeline_mode<synchronous>, transform_indices = @transform_4, window_bounds = array<i64: 1, 128>}, {transform_indices = @transform_5, window_bounds = array<i64: 8, 128>}]} {
    %c0 = arith.constant 0 : index
    %c0_0 = arith.constant 0 : index
    %0 = vector.load %arg1[%c0, %c0_0] : memref<8x256xbf16, #tpu.memory_space<vmem>>, vector<8x256xbf16>
    %1 = arith.extf %0 : vector<8x256xbf16> to vector<8x256xf32>
    %c0_1 = arith.constant 0 : index
    %c0_2 = arith.constant 0 : index
    %2 = vector.load %arg2[%c0_1, %c0_2] : memref<1x64xf32, #tpu.memory_space<vmem>>, vector<1x64xf32>
    %c0_3 = arith.constant 0 : index
    %c0_4 = arith.constant 0 : index
    %3 = vector.load %arg3[%c0_3, %c0_4] : memref<1x64xf32, #tpu.memory_space<vmem>>, vector<1x64xf32>
    %4 = vector.extract_strided_slice %1 {offsets = [0, 0], sizes = [8, 64], strides = [1, 1]} : vector<8x256xf32> to vector<8x64xf32>
    %cst = arith.constant dense<0.000000e+00> : vector<8xf32>
    %5 = vector.multi_reduction <add>, %4, %cst [1] : vector<8x64xf32> to vector<8xf32>
    %6 = vector.shape_cast %5 : vector<8xf32> to vector<8x1xf32>
    %cst_5 = arith.constant 1.562500e-02 : f32
    %7 = vector.broadcast %cst_5 : f32 to vector<8x1xf32>
    %8 = arith.mulf %6, %7 : vector<8x1xf32>
    %9 = vector.broadcast %8 : vector<8x1xf32> to vector<8x64xf32>
    %10 = arith.subf %4, %9 : vector<8x64xf32>
    %11 = arith.mulf %10, %10 : vector<8x64xf32>
    %cst_6 = arith.constant dense<0.000000e+00> : vector<8xf32>
    %12 = vector.multi_reduction <add>, %11, %cst_6 [1] : vector<8x64xf32> to vector<8xf32>
    %13 = vector.shape_cast %12 : vector<8xf32> to vector<8x1xf32>
    %cst_7 = arith.constant 1.562500e-02 : f32
    %14 = vector.broadcast %cst_7 : f32 to vector<8x1xf32>
    %15 = arith.mulf %13, %14 : vector<8x1xf32>
    %cst_8 = arith.constant 9.99999974E-6 : f32
    %16 = vector.broadcast %cst_8 : f32 to vector<8x1xf32>
    %17 = arith.addf %15, %16 : vector<8x1xf32>
    %18 = math.rsqrt %17 : vector<8x1xf32>
    %19 = vector.broadcast %18 : vector<8x1xf32> to vector<8x64xf32>
    %20 = arith.mulf %10, %19 : vector<8x64xf32>
    %21 = vector.broadcast %2 : vector<1x64xf32> to vector<8x64xf32>
    %22 = arith.mulf %20, %21 : vector<8x64xf32>
    %23 = vector.broadcast %3 : vector<1x64xf32> to vector<8x64xf32>
    %24 = arith.addf %22, %23 : vector<8x64xf32>
    %25 = vector.extract_strided_slice %1 {offsets = [0, 64], sizes = [8, 64], strides = [1, 1]} : vector<8x256xf32> to vector<8x64xf32>
    %cst_9 = arith.constant dense<0.000000e+00> : vector<8xf32>
    %26 = vector.multi_reduction <add>, %25, %cst_9 [1] : vector<8x64xf32> to vector<8xf32>
    %27 = vector.shape_cast %26 : vector<8xf32> to vector<8x1xf32>
    %cst_10 = arith.constant 1.562500e-02 : f32
    %28 = vector.broadcast %cst_10 : f32 to vector<8x1xf32>
    %29 = arith.mulf %27, %28 : vector<8x1xf32>
    %30 = vector.broadcast %29 : vector<8x1xf32> to vector<8x64xf32>
    %31 = arith.subf %25, %30 : vector<8x64xf32>
    %32 = arith.mulf %31, %31 : vector<8x64xf32>
    %cst_11 = arith.constant dense<0.000000e+00> : vector<8xf32>
    %33 = vector.multi_reduction <add>, %32, %cst_11 [1] : vector<8x64xf32> to vector<8xf32>
    %34 = vector.shape_cast %33 : vector<8xf32> to vector<8x1xf32>
    %cst_12 = arith.constant 1.562500e-02 : f32
    %35 = vector.broadcast %cst_12 : f32 to vector<8x1xf32>
    %36 = arith.mulf %34, %35 : vector<8x1xf32>
    %cst_13 = arith.constant 9.99999974E-6 : f32
    %37 = vector.broadcast %cst_13 : f32 to vector<8x1xf32>
    %38 = arith.addf %36, %37 : vector<8x1xf32>
    %39 = math.rsqrt %38 : vector<8x1xf32>
    %40 = vector.broadcast %39 : vector<8x1xf32> to vector<8x64xf32>
    %41 = arith.mulf %31, %40 : vector<8x64xf32>
    %42 = vector.broadcast %2 : vector<1x64xf32> to vector<8x64xf32>
    %43 = arith.mulf %41, %42 : vector<8x64xf32>
    %44 = vector.broadcast %3 : vector<1x64xf32> to vector<8x64xf32>
    %45 = arith.addf %43, %44 : vector<8x64xf32>
    %46 = vector.extract_strided_slice %1 {offsets = [0, 128], sizes = [8, 64], strides = [1, 1]} : vector<8x256xf32> to vector<8x64xf32>
    %cst_14 = arith.constant dense<0.000000e+00> : vector<8xf32>
    %47 = vector.multi_reduction <add>, %46, %cst_14 [1] : vector<8x64xf32> to vector<8xf32>
    %48 = vector.shape_cast %47 : vector<8xf32> to vector<8x1xf32>
    %cst_15 = arith.constant 1.562500e-02 : f32
    %49 = vector.broadcast %cst_15 : f32 to vector<8x1xf32>
    %50 = arith.mulf %48, %49 : vector<8x1xf32>
    %51 = vector.broadcast %50 : vector<8x1xf32> to vector<8x64xf32>
    %52 = arith.subf %46, %51 : vector<8x64xf32>
    %53 = arith.mulf %52, %52 : vector<8x64xf32>
    %cst_16 = arith.constant dense<0.000000e+00> : vector<8xf32>
    %54 = vector.multi_reduction <add>, %53, %cst_16 [1] : vector<8x64xf32> to vector<8xf32>
    %55 = vector.shape_cast %54 : vector<8xf32> to vector<8x1xf32>
    %cst_17 = arith.constant 1.562500e-02 : f32
    %56 = vector.broadcast %cst_17 : f32 to vector<8x1xf32>
    %57 = arith.mulf %55, %56 : vector<8x1xf32>
    %cst_18 = arith.constant 9.99999974E-6 : f32
    %58 = vector.broadcast %cst_18 : f32 to vector<8x1xf32>
    %59 = arith.addf %57, %58 : vector<8x1xf32>
    %60 = math.rsqrt %59 : vector<8x1xf32>
    %61 = vector.broadcast %60 : vector<8x1xf32> to vector<8x64xf32>
    %62 = arith.mulf %52, %61 : vector<8x64xf32>
    %63 = vector.broadcast %2 : vector<1x64xf32> to vector<8x64xf32>
    %64 = arith.mulf %62, %63 : vector<8x64xf32>
    %65 = vector.broadcast %3 : vector<1x64xf32> to vector<8x64xf32>
    %66 = arith.addf %64, %65 : vector<8x64xf32>
    %67 = vector.extract_strided_slice %1 {offsets = [0, 192], sizes = [8, 64], strides = [1, 1]} : vector<8x256xf32> to vector<8x64xf32>
    %cst_19 = arith.constant dense<0.000000e+00> : vector<8xf32>
    %68 = vector.multi_reduction <add>, %67, %cst_19 [1] : vector<8x64xf32> to vector<8xf32>
    %69 = vector.shape_cast %68 : vector<8xf32> to vector<8x1xf32>
    %cst_20 = arith.constant 1.562500e-02 : f32
    %70 = vector.broadcast %cst_20 : f32 to vector<8x1xf32>
    %71 = arith.mulf %69, %70 : vector<8x1xf32>
    %72 = vector.broadcast %71 : vector<8x1xf32> to vector<8x64xf32>
    %73 = arith.subf %67, %72 : vector<8x64xf32>
    %74 = arith.mulf %73, %73 : vector<8x64xf32>
    %cst_21 = arith.constant dense<0.000000e+00> : vector<8xf32>
    %75 = vector.multi_reduction <add>, %74, %cst_21 [1] : vector<8x64xf32> to vector<8xf32>
    %76 = vector.shape_cast %75 : vector<8xf32> to vector<8x1xf32>
    %cst_22 = arith.constant 1.562500e-02 : f32
    %77 = vector.broadcast %cst_22 : f32 to vector<8x1xf32>
    %78 = arith.mulf %76, %77 : vector<8x1xf32>
    %cst_23 = arith.constant 9.99999974E-6 : f32
    %79 = vector.broadcast %cst_23 : f32 to vector<8x1xf32>
    %80 = arith.addf %78, %79 : vector<8x1xf32>
    %81 = math.rsqrt %80 : vector<8x1xf32>
    %82 = vector.broadcast %81 : vector<8x1xf32> to vector<8x64xf32>
    %83 = arith.mulf %73, %82 : vector<8x64xf32>
    %84 = vector.broadcast %2 : vector<1x64xf32> to vector<8x64xf32>
    %85 = arith.mulf %83, %84 : vector<8x64xf32>
    %86 = vector.broadcast %3 : vector<1x64xf32> to vector<8x64xf32>
    %87 = arith.addf %85, %86 : vector<8x64xf32>
    %88 = tpu.concatenate %24, %45, %66, %87 in 1 : vector<8x64xf32>, vector<8x64xf32>, vector<8x64xf32>, vector<8x64xf32> -> vector<8x256xf32>
    %89 = arith.truncf %88 : vector<8x256xf32> to vector<8x256xbf16>
    %c0_24 = arith.constant 0 : index
    %c0_25 = arith.constant 0 : index
    %90 = vector.load %arg4[%c0_24, %c0_25] : memref<256x128xbf16, #tpu.memory_space<vmem>>, vector<256x128xbf16>
    %cst_26 = arith.constant dense<0.000000e+00> : vector<8x128xf32>
    %91 = tpu.matmul %89, %90, %cst_26 {dimension_numbers = #tpu.dot_dimension_numbers<[1], [0], [0], [1], [0, 0, 1, 1], [], []>} : vector<8x256xbf16>, vector<256x128xbf16>, vector<8x128xf32> -> vector<8x128xf32>
    %c0_27 = arith.constant 0 : index
    %c0_28 = arith.constant 0 : index
    %92 = vector.load %arg5[%c0_27, %c0_28] : memref<1x128xf32, #tpu.memory_space<vmem>>, vector<1x128xf32>
    %93 = vector.broadcast %92 : vector<1x128xf32> to vector<8x128xf32>
    %94 = arith.addf %91, %93 : vector<8x128xf32>
    %95 = arith.truncf %94 : vector<8x128xf32> to vector<8x128xbf16>
    %c0_29 = arith.constant 0 : index
    %c0_30 = arith.constant 0 : index
    %96 = vector.load %arg6[%c0_29, %c0_30] : memref<8x128xbf16, #tpu.memory_space<vmem>>, vector<8x128xbf16>
    tpu.vector_store %arg6[%c0_29, %c0_30], %95 {strides = array<i32>} : memref<8x128xbf16, #tpu.memory_space<vmem>>, vector<8x128xbf16>,
    return
  }
  func.func @transform_0(%arg0: i32) -> (i32, i32) {
    %c0_i32 = arith.constant 0 : i32
    %c0_i32_0 = arith.constant 0 : i32
    return %arg0, %c0_i32 : i32, i32
  }
  func.func @transform_1(%arg0: i32) -> (i32, i32) {
    %c0_i32 = arith.constant 0 : i32
    %c0_i32_0 = arith.constant 0 : i32
    %c0_i32_1 = arith.constant 0 : i32
    return %c0_i32, %c0_i32_0 : i32, i32
  }
  func.func @transform_2(%arg0: i32) -> (i32, i32) {
    %c0_i32 = arith.constant 0 : i32
    %c0_i32_0 = arith.constant 0 : i32
    %c0_i32_1 = arith.constant 0 : i32
    return %c0_i32, %c0_i32_0 : i32, i32
  }
  func.func @transform_3(%arg0: i32) -> (i32, i32) {
    %c0_i32 = arith.constant 0 : i32
    %c0_i32_0 = arith.constant 0 : i32
    %c0_i32_1 = arith.constant 0 : i32
    return %c0_i32, %c0_i32_0 : i32, i32
  }
  func.func @transform_4(%arg0: i32) -> (i32, i32) {
    %c0_i32 = arith.constant 0 : i32
    %c0_i32_0 = arith.constant 0 : i32
    %c0_i32_1 = arith.constant 0 : i32
    return %c0_i32, %c0_i32_0 : i32, i32
  }
  func.func @transform_5(%arg0: i32) -> (i32, i32) {
    %c0_i32 = arith.constant 0 : i32
    %c0_i32_0 = arith.constant 0 : i32
    return %arg0, %c0_i32 : i32, i32
  }
}

module attributes {stable_mosaic.version = 11 : i64} {
  func.func @_fused_ln_linear_kernel(%arg0: i32, %arg1: memref<4x256xbf16, #tpu.memory_space<vmem>>, %arg2: memref<1x64xf32, #tpu.memory_space<vmem>>, %arg3: memref<1x64xf32, #tpu.memory_space<vmem>>, %arg4: memref<256x128xbf16, #tpu.memory_space<vmem>>, %arg5: memref<1x128xf32, #tpu.memory_space<vmem>>, %arg6: memref<4x128xbf16, #tpu.memory_space<vmem>>) attributes {dimension_semantics = [#tpu.dimension_semantics<parallel>], iteration_bounds = array<i64: 1>, scalar_prefetch = 0 : i64, scratch_operands = 0 : i64, tpu.core_type = #tpu.core_type<tc>, window_params = [{transform_indices = @transform_0, window_bounds = array<i64: 4, 256>}, {pipeline_mode = #tpu.pipeline_mode<synchronous>, transform_indices = @transform_1, window_bounds = array<i64: 1, 64>}, {pipeline_mode = #tpu.pipeline_mode<synchronous>, transform_indices = @transform_2, window_bounds = array<i64: 1, 64>}, {pipeline_mode = #tpu.pipeline_mode<synchronous>, transform_indices = @transform_3, window_bounds = array<i64: 256, 128>}, {pipeline_mode = #tpu.pipeline_mode<synchronous>, transform_indices = @transform_4, window_bounds = array<i64: 1, 128>}, {transform_indices = @transform_5, window_bounds = array<i64: 4, 128>}]} {
    %c0 = arith.constant 0 : index
    %c0_0 = arith.constant 0 : index
    %0 = vector.load %arg1[%c0, %c0_0] : memref<4x256xbf16, #tpu.memory_space<vmem>>, vector<4x256xbf16>
    %1 = arith.extf %0 : vector<4x256xbf16> to vector<4x256xf32>
    %c0_1 = arith.constant 0 : index
    %c0_2 = arith.constant 0 : index
    %2 = vector.load %arg2[%c0_1, %c0_2] : memref<1x64xf32, #tpu.memory_space<vmem>>, vector<1x64xf32>
    %c0_3 = arith.constant 0 : index
    %c0_4 = arith.constant 0 : index
    %3 = vector.load %arg3[%c0_3, %c0_4] : memref<1x64xf32, #tpu.memory_space<vmem>>, vector<1x64xf32>
    %4 = vector.extract_strided_slice %1 {offsets = [0, 0], sizes = [4, 64], strides = [1, 1]} : vector<4x256xf32> to vector<4x64xf32>
    %cst = arith.constant dense<0.000000e+00> : vector<4xf32>
    %5 = vector.multi_reduction <add>, %4, %cst [1] : vector<4x64xf32> to vector<4xf32>
    %6 = vector.shape_cast %5 : vector<4xf32> to vector<4x1xf32>
    %cst_5 = arith.constant 1.562500e-02 : f32
    %7 = vector.broadcast %cst_5 : f32 to vector<4x1xf32>
    %8 = arith.mulf %6, %7 : vector<4x1xf32>
    %9 = vector.broadcast %8 : vector<4x1xf32> to vector<4x64xf32>
    %10 = arith.subf %4, %9 : vector<4x64xf32>
    %11 = arith.mulf %10, %10 : vector<4x64xf32>
    %cst_6 = arith.constant dense<0.000000e+00> : vector<4xf32>
    %12 = vector.multi_reduction <add>, %11, %cst_6 [1] : vector<4x64xf32> to vector<4xf32>
    %13 = vector.shape_cast %12 : vector<4xf32> to vector<4x1xf32>
    %cst_7 = arith.constant 1.562500e-02 : f32
    %14 = vector.broadcast %cst_7 : f32 to vector<4x1xf32>
    %15 = arith.mulf %13, %14 : vector<4x1xf32>
    %cst_8 = arith.constant 9.99999974E-6 : f32
    %16 = vector.broadcast %cst_8 : f32 to vector<4x1xf32>
    %17 = arith.addf %15, %16 : vector<4x1xf32>
    %18 = math.rsqrt %17 : vector<4x1xf32>
    %19 = vector.broadcast %18 : vector<4x1xf32> to vector<4x64xf32>
    %20 = arith.mulf %10, %19 : vector<4x64xf32>
    %21 = vector.broadcast %2 : vector<1x64xf32> to vector<4x64xf32>
    %22 = arith.mulf %20, %21 : vector<4x64xf32>
    %23 = vector.broadcast %3 : vector<1x64xf32> to vector<4x64xf32>
    %24 = arith.addf %22, %23 : vector<4x64xf32>
    %25 = vector.extract_strided_slice %1 {offsets = [0, 64], sizes = [4, 64], strides = [1, 1]} : vector<4x256xf32> to vector<4x64xf32>
    %cst_9 = arith.constant dense<0.000000e+00> : vector<4xf32>
    %26 = vector.multi_reduction <add>, %25, %cst_9 [1] : vector<4x64xf32> to vector<4xf32>
    %27 = vector.shape_cast %26 : vector<4xf32> to vector<4x1xf32>
    %cst_10 = arith.constant 1.562500e-02 : f32
    %28 = vector.broadcast %cst_10 : f32 to vector<4x1xf32>
    %29 = arith.mulf %27, %28 : vector<4x1xf32>
    %30 = vector.broadcast %29 : vector<4x1xf32> to vector<4x64xf32>
    %31 = arith.subf %25, %30 : vector<4x64xf32>
    %32 = arith.mulf %31, %31 : vector<4x64xf32>
    %cst_11 = arith.constant dense<0.000000e+00> : vector<4xf32>
    %33 = vector.multi_reduction <add>, %32, %cst_11 [1] : vector<4x64xf32> to vector<4xf32>
    %34 = vector.shape_cast %33 : vector<4xf32> to vector<4x1xf32>
    %cst_12 = arith.constant 1.562500e-02 : f32
    %35 = vector.broadcast %cst_12 : f32 to vector<4x1xf32>
    %36 = arith.mulf %34, %35 : vector<4x1xf32>
    %cst_13 = arith.constant 9.99999974E-6 : f32
    %37 = vector.broadcast %cst_13 : f32 to vector<4x1xf32>
    %38 = arith.addf %36, %37 : vector<4x1xf32>
    %39 = math.rsqrt %38 : vector<4x1xf32>
    %40 = vector.broadcast %39 : vector<4x1xf32> to vector<4x64xf32>
    %41 = arith.mulf %31, %40 : vector<4x64xf32>
    %42 = vector.broadcast %2 : vector<1x64xf32> to vector<4x64xf32>
    %43 = arith.mulf %41, %42 : vector<4x64xf32>
    %44 = vector.broadcast %3 : vector<1x64xf32> to vector<4x64xf32>
    %45 = arith.addf %43, %44 : vector<4x64xf32>
    %46 = vector.extract_strided_slice %1 {offsets = [0, 128], sizes = [4, 64], strides = [1, 1]} : vector<4x256xf32> to vector<4x64xf32>
    %cst_14 = arith.constant dense<0.000000e+00> : vector<4xf32>
    %47 = vector.multi_reduction <add>, %46, %cst_14 [1] : vector<4x64xf32> to vector<4xf32>
    %48 = vector.shape_cast %47 : vector<4xf32> to vector<4x1xf32>
    %cst_15 = arith.constant 1.562500e-02 : f32
    %49 = vector.broadcast %cst_15 : f32 to vector<4x1xf32>
    %50 = arith.mulf %48, %49 : vector<4x1xf32>
    %51 = vector.broadcast %50 : vector<4x1xf32> to vector<4x64xf32>
    %52 = arith.subf %46, %51 : vector<4x64xf32>
    %53 = arith.mulf %52, %52 : vector<4x64xf32>
    %cst_16 = arith.constant dense<0.000000e+00> : vector<4xf32>
    %54 = vector.multi_reduction <add>, %53, %cst_16 [1] : vector<4x64xf32> to vector<4xf32>
    %55 = vector.shape_cast %54 : vector<4xf32> to vector<4x1xf32>
    %cst_17 = arith.constant 1.562500e-02 : f32
    %56 = vector.broadcast %cst_17 : f32 to vector<4x1xf32>
    %57 = arith.mulf %55, %56 : vector<4x1xf32>
    %cst_18 = arith.constant 9.99999974E-6 : f32
    %58 = vector.broadcast %cst_18 : f32 to vector<4x1xf32>
    %59 = arith.addf %57, %58 : vector<4x1xf32>
    %60 = math.rsqrt %59 : vector<4x1xf32>
    %61 = vector.broadcast %60 : vector<4x1xf32> to vector<4x64xf32>
    %62 = arith.mulf %52, %61 : vector<4x64xf32>
    %63 = vector.broadcast %2 : vector<1x64xf32> to vector<4x64xf32>
    %64 = arith.mulf %62, %63 : vector<4x64xf32>
    %65 = vector.broadcast %3 : vector<1x64xf32> to vector<4x64xf32>
    %66 = arith.addf %64, %65 : vector<4x64xf32>
    %67 = vector.extract_strided_slice %1 {offsets = [0, 192], sizes = [4, 64], strides = [1, 1]} : vector<4x256xf32> to vector<4x64xf32>
    %cst_19 = arith.constant dense<0.000000e+00> : vector<4xf32>
    %68 = vector.multi_reduction <add>, %67, %cst_19 [1] : vector<4x64xf32> to vector<4xf32>
    %69 = vector.shape_cast %68 : vector<4xf32> to vector<4x1xf32>
    %cst_20 = arith.constant 1.562500e-02 : f32
    %70 = vector.broadcast %cst_20 : f32 to vector<4x1xf32>
    %71 = arith.mulf %69, %70 : vector<4x1xf32>
    %72 = vector.broadcast %71 : vector<4x1xf32> to vector<4x64xf32>
    %73 = arith.subf %67, %72 : vector<4x64xf32>
    %74 = arith.mulf %73, %73 : vector<4x64xf32>
    %cst_21 = arith.constant dense<0.000000e+00> : vector<4xf32>
    %75 = vector.multi_reduction <add>, %74, %cst_21 [1] : vector<4x64xf32> to vector<4xf32>
    %76 = vector.shape_cast %75 : vector<4xf32> to vector<4x1xf32>
    %cst_22 = arith.constant 1.562500e-02 : f32
    %77 = vector.broadcast %cst_22 : f32 to vector<4x1xf32>
    %78 = arith.mulf %76, %77 : vector<4x1xf32>
    %cst_23 = arith.constant 9.99999974E-6 : f32
    %79 = vector.broadcast %cst_23 : f32 to vector<4x1xf32>
    %80 = arith.addf %78, %79 : vector<4x1xf32>
    %81 = math.rsqrt %80 : vector<4x1xf32>
    %82 = vector.broadcast %81 : vector<4x1xf32> to vector<4x64xf32>
    %83 = arith.mulf %73, %82 : vector<4x64xf32>
    %84 = vector.broadcast %2 : vector<1x64xf32> to vector<4x64xf32>
    %85 = arith.mulf %83, %84 : vector<4x64xf32>
    %86 = vector.broadcast %3 : vector<1x64xf32> to vector<4x64xf32>
    %87 = arith.addf %85, %86 : vector<4x64xf32>
    %88 = tpu.concatenate %24, %45, %66, %87 in 1 : vector<4x64xf32>, vector<4x64xf32>, vector<4x64xf32>, vector<4x64xf32> -> vector<4x256xf32>
    %89 = arith.truncf %88 : vector<4x256xf32> to vector<4x256xbf16>
    %c0_24 = arith.constant 0 : index
    %c0_25 = arith.constant 0 : index
    %90 = vector.load %arg4[%c0_24, %c0_25] : memref<256x128xbf16, #tpu.memory_space<vmem>>, vector<256x128xbf16>
    %cst_26 = arith.constant dense<0.000000e+00> : vector<4x128xf32>
    %91 = tpu.matmul %89, %90, %cst_26 {dimension_numbers = #tpu.dot_dimension_numbers<[1], [0], [0], [1], [0, 0, 1, 1], [], []>} : vector<4x256xbf16>, vector<256x128xbf16>, vector<4x128xf32> -> vector<4x128xf32>
    %c0_27 = arith.constant 0 : index
    %c0_28 = arith.constant 0 : index
    %92 = vector.load %arg5[%c0_27, %c0_28] : memref<1x128xf32, #tpu.memory_space<vmem>>, vector<1x128xf32>
    %93 = vector.broadcast %92 : vector<1x128xf32> to vector<4x128xf32>
    %94 = arith.addf %91, %93 : vector<4x128xf32>
    %95 = arith.truncf %94 : vector<4x128xf32> to vector<4x128xbf16>
    %c0_29 = arith.constant 0 : index
    %c0_30 = arith.constant 0 : index
    %96 = vector.load %arg6[%c0_29, %c0_30] : memref<4x128xbf16, #tpu.memory_space<vmem>>, vector<4x128xbf16>
    tpu.vector_store %arg6[%c0_29, %c0_30], %95 {strides = array<i32>} : memref<4x128xbf16, #tpu.memory_space<vmem>>, vector<4x128xbf16>,
    return
  }
  func.func @transform_0(%arg0: i32) -> (i32, i32) {
    %c0_i32 = arith.constant 0 : i32
    %c0_i32_0 = arith.constant 0 : i32
    return %arg0, %c0_i32 : i32, i32
  }
  func.func @transform_1(%arg0: i32) -> (i32, i32) {
    %c0_i32 = arith.constant 0 : i32
    %c0_i32_0 = arith.constant 0 : i32
    %c0_i32_1 = arith.constant 0 : i32
    return %c0_i32, %c0_i32_0 : i32, i32
  }
  func.func @transform_2(%arg0: i32) -> (i32, i32) {
    %c0_i32 = arith.constant 0 : i32
    %c0_i32_0 = arith.constant 0 : i32
    %c0_i32_1 = arith.constant 0 : i32
    return %c0_i32, %c0_i32_0 : i32, i32
  }
  func.func @transform_3(%arg0: i32) -> (i32, i32) {
    %c0_i32 = arith.constant 0 : i32
    %c0_i32_0 = arith.constant 0 : i32
    %c0_i32_1 = arith.constant 0 : i32
    return %c0_i32, %c0_i32_0 : i32, i32
  }
  func.func @transform_4(%arg0: i32) -> (i32, i32) {
    %c0_i32 = arith.constant 0 : i32
    %c0_i32_0 = arith.constant 0 : i32
    %c0_i32_1 = arith.constant 0 : i32
    return %c0_i32, %c0_i32_0 : i32, i32
  }
  func.func @transform_5(%arg0: i32) -> (i32, i32) {
    %c0_i32 = arith.constant 0 : i32
    %c0_i32_0 = arith.constant 0 : i32
    return %arg0, %c0_i32 : i32, i32
  }
}

</mosaic_0001>

<bundles_post_ra>
// kernel: encoder_forward.2
= control target key start
LH: loop header
LB: loop body
LE: loop exit
PB: predicated region body
PF: predicated region fallthrough
CT: control target
= control target key end

     0   :  { %s377_s20 = smov 64   ;;  %vm26_vm0 = vcmask 523264   ;;  %s496_s0 = inlined_call_operand.vmem [shape: bf16[8,256], index: 0, kind: input, shape index: {}]   ;;  %s497_s3 = inlined_call_operand.vmem [shape: bf16[256,128], index: 3, kind: input, shape index: {}]   ;;  %s498_s1 = inlined_call_operand.vmem [shape: f32[1,64], index: 1, kind: input, shape index: {}]   ;;  %s499_s2 = inlined_call_operand.vmem [shape: f32[1,64], index: 2, kind: input, shape index: {}]   ;;  %s500_s4 = inlined_call_operand.vmem [shape: f32[1,128], index: 4, kind: input, shape index: {}]   ;;  %s501_s5 = inlined_call_operand.vmem [shape: bf16[8,128], index: 5, kind: output, shape index: {}]  }
   0x1   :  { %v21_v0 = vld [vmem:[%s496_s0] sm:$0xff]  ;;  %v353_v29 = vld [vmem:[%s497_s3 + $0x78] sm:$0xff]   ;;  %v355_v35 = vld [vmem:[%s497_s3 + $0x70] sm:$0xff]  }
   0x2   :  { %v22_v1 = vunpack.c.l.bf16 %v21_v0  ;;  %v23_v2 = vunpack.c.h.bf16 %v21_v0  ;;  %325 = vmatprep.subr.bf16.mxu0 %v353_v29  ;;  %v354_v34 = vld [vmem:[%s497_s3 + $0x38] sm:$0xff]   ;;  %v356_v36 = vld [vmem:[%s497_s3 + $0x30] sm:$0xff]   ;;  %v357_v37 = vld [vmem:[%s497_s3 + $0x68] sm:$0xff]  }
   0x3   :  { %326 = vmatpush3.bf16.msra.mxu0 %v354_v34  ;;  %v358_v38 = vld [vmem:[%s497_s3 + $0x28] sm:$0xff]   ;;  %v359_v39 = vld [vmem:[%s497_s3 + $0x60] sm:$0xff]   ;;  %v361_v41 = vld [vmem:[%s497_s3 + $0x58] sm:$0xff]  }
   0x4   :  { %v348_v3 = vpack.i.bf16 %v22_v1, %v23_v2  ;;  %v83_v9 = vsel %vm26_vm0, %v23_v2, 0.0  ;;  %v27_v10 = vsel %vm26_vm0, %v22_v1, 0.0  ;;  %327 = vmatprep.subr.bf16.mxu0 %v355_v35  ;;  %v360_v40 = vld [vmem:[%s497_s3 + $0x20] sm:$0xff]   ;;  %v362_v42 = vld [vmem:[%s497_s3 + $0x18] sm:$0xff]   ;;  %v363_v45 = vld [vmem:[%s497_s3 + $0x50] sm:$0xff]  }
   0x5   :  { %v306_v43 = vld [vmem:[%s498_s1] ss:$0 sm:$0xff]  ;;  %v364_v46 = vld [vmem:[%s497_s3 + $0x10] sm:$0xff]   ;;  %v365_v49 = vld [vmem:[%s497_s3 + $0x48] sm:$0xff]  }
   0x6   :  { %349 = vrot.lane.b32.xlu0 %v348_v3, %s377_s20  ;;  %v307_v44 = vld [vmem:[%s499_s2] ss:$0 sm:$0xff]  ;;  %v366_v50 = vld [vmem:[%s497_s3 + $0x8] sm:$0xff]  }
   0x7   :  { %328 = vmatpush3.bf16.msra.mxu0 %v356_v36  ;;  %v367_v52 = vld [vmem:[%s497_s3 + $0x40] sm:$0xff]  }
   0x8   :  { %329 = vmatprep.subr.bf16.mxu0 %v357_v37  ;;  %v368_v53 = vld [vmem:[%s497_s3] sm:$0xff]  }
   0xb   :  { %330 = vmatpush3.bf16.msra.mxu0 %v358_v38 }
   0xc   :  { %331 = vmatprep.subr.bf16.mxu0 %v359_v39 }
   0xf   :  { %332 = vmatpush3.bf16.msra.mxu0 %v360_v40 }
  0x10   :  { %333 = vmatprep.subr.bf16.mxu0 %v361_v41 }
  0x13   :  { %334 = vmatpush3.bf16.msra.mxu0 %v362_v42 }
  0x14   :  { %335 = vmatprep.subr.bf16.mxu0 %v363_v45 }
  0x17   :  { %336 = vmatpush3.bf16.msra.mxu0 %v364_v46 }
  0x18   :  { %337 = vmatprep.subr.bf16.mxu0 %v365_v49 }
  0x1b   :  { %338 = vmatpush3.bf16.msra.mxu0 %v366_v50 }
  0x1c   :  { %339 = vmatprep.subr.bf16.mxu0 %v367_v52 }
  0x1f   :  { %340 = vmatpush3.bf16.msra.mxu0 %v368_v53 }
  0x78   :  { %v350_v4 = vpop.permute.xlu0 %349 }
  0x79   :  { %v351_v5 = vunpack.i.l.bf16 %v350_v4  ;;  %v352_v6 = vunpack.i.h.bf16 %v350_v4 }
  0x7b   :  { %v58_v7 = vsel %vm26_vm0, %v352_v6, 0.0  ;;  %v102_v8 = vsel %vm26_vm0, %v351_v5, 0.0 }
  0x7c   :  { %59 = vadd.xlane.f32.xlu1 %v58_v7  ;;  %103 = vadd.xlane.f32.xlu0 %v102_v8 }
  0x80   :  { %84 = vadd.xlane.f32.xlu1 %v83_v9 }
  0x84   :  { %28 = vadd.xlane.f32.xlu1 %v27_v10 }
 0x105   :  { %v60_v11 = vpop.xlane.xlu1 %59  ;;  %v104_v12 = vpop.xlane.xlu0 %103 }
 0x106   :  { %v61_v13 = vmul.f32 0.015625, %v60_v11  ;;  %v105_v14 = vmul.f32 0.015625, %v104_v12 }
 0x108   :  { %v416_v15 = vsub.f32 %v23_v2, %v105_v14  ;;  %v418_v17 = vsub.f32 %v22_v1, %v61_v13 }
 0x109   :  { %v85_v16 = vpop.xlane.xlu1 %84 }
 0x10a   :  { %v107_v18 = vmul.f32 %v416_v15, %v416_v15  ;;  %v63_v21 = vmul.f32 %v418_v17, %v418_v17  ;;  %v86_v25 = vmul.f32 0.015625, %v85_v16 }
 0x10c   :  { %109 = vrot.lane.b32.xlu1 %v107_v18, %s377_s20  ;;  %v87_v26 = vsub.f32 %v23_v2, %v86_v25 }
 0x10d   :  { %v29_v19 = vpop.xlane.xlu1 %28 }
 0x10e   :  { %v30_v20 = vmul.f32 0.015625, %v29_v19  ;;  %v88_v27 = vmul.f32 %v87_v26, %v87_v26 }
 0x110   :  { %v31_v22 = vsub.f32 %v22_v1, %v30_v20  ;;  %65 = vrot.lane.b32.xlu1 %v63_v21, %s377_s20  ;;  %v89_v28 = vsel %vm26_vm0, %v88_v27, 0.0 }
 0x112   :  { %v32_v23 = vmul.f32 %v31_v22, %v31_v22 }
 0x114   :  { %v33_v24 = vsel %vm26_vm0, %v32_v23, 0.0 }
 0x115   :  { %34 = vadd.xlane.f32.xlu0 %v33_v24 }
 0x134   :  { %90 = vadd.xlane.f32.xlu1 %v89_v28 }
 0x17e   :  { %v110_v30 = vpop.permute.xlu1 %109 }
 0x17f   :  { %v112_v31 = vsel %vm26_vm0, %v110_v30, 0.0 }
 0x180   :  { %113 = vadd.xlane.f32.xlu0 %v112_v31 }
 0x182   :  { %v66_v32 = vpop.permute.xlu1 %65 }
 0x183   :  { %v68_v33 = vsel %vm26_vm0, %v66_v32, 0.0 }
 0x184   :  { %69 = vadd.xlane.f32.xlu0 %v68_v33 }
 0x19a   :  { %75 = vrot.lane.b32.xlu0 %v306_v43, %s377_s20 }
 0x19e   :  { %v35_v47 = vpop.xlane.xlu0 %34  ;;  %79 = vrot.lane.b32.xlu0 %v307_v44, %s377_s20 }
 0x19f   :  { %v36_v48 = vmul.f32 0.015625, %v35_v47 }
 0x1a1   :  { %v37_v51 = vadd.f32 1e-05, %v36_v48 }
 0x1a3   :  { %369 = vrsqrt.f32 %v37_v51 }
 0x1b0   :  { %v370_v54 = vpop.eup %369 }
 0x1b1   :  { %v39_v55 = vmul.f32 %v370_v54, %v31_v22 }
 0x1b3   :  { %v46_v56 = vmul.f32 %v306_v43, %v39_v55 }
 0x1b5   :  { %v53_v57 = vadd.f32 %v307_v44, %v46_v56 }
 0x1bd   :  { %v91_v58 = vpop.xlane.xlu1 %90 }
 0x1be   :  { %v92_v59 = vmul.f32 0.015625, %v91_v58 }
 0x1c0   :  { %v93_v60 = vadd.f32 1e-05, %v92_v59 }
 0x1c2   :  { %371 = vrsqrt.f32 %v93_v60 }
 0x1cf   :  { %v372_v61 = vpop.eup %371 }
 0x1d0   :  { %v95_v62 = vmul.f32 %v372_v61, %v87_v26 }
 0x1d2   :  { %v96_v63 = vmul.f32 %v306_v43, %v95_v62 }
 0x1d4   :  { %v97_v0 = vadd.f32 %v307_v44, %v96_v63 }
 0x209   :  { %v114_v1 = vpop.xlane.xlu0 %113 }
 0x20a   :  { %v115_v2 = vmul.f32 0.015625, %v114_v1 }
 0x20c   :  { %v116_v3 = vadd.f32 1e-05, %v115_v2 }
 0x20d   :  { %v70_v4 = vpop.xlane.xlu0 %69 }
 0x20e   :  { %373 = vrsqrt.f32 %v116_v3  ;;  %v71_v5 = vmul.f32 0.015625, %v70_v4 }
 0x210   :  { %v72_v6 = vadd.f32 1e-05, %v71_v5 }
 0x211   :  { %v76_v7 = vpop.permute.xlu0 %75 }
 0x212   :  { %375 = vrsqrt.f32 %v72_v6 }
 0x215   :  { %v80_v10 = vpop.permute.xlu0 %79 }
 0x21b   :  { %v374_v8 = vpop.eup %373 }
 0x21c   :  { %v118_v9 = vmul.f32 %v374_v8, %v416_v15  ;;  %v308_v15 = vld [vmem:[%s500_s4] ss:$0 sm:$0xff] }
 0x21e   :  { %v119_v11 = vmul.f32 %v118_v9, %v76_v7 }
 0x21f   :  { %v376_v12 = vpop.eup %375 }
 0x220   :  { %v74_v13 = vmul.f32 %v376_v12, %v418_v17  ;;  %v120_v14 = vadd.f32 %v119_v11, %v80_v10 }
 0x222   :  { %v78_v16 = vmul.f32 %v76_v7, %v74_v13  ;;  %v122_v18 = vsel %vm26_vm0, %v97_v0, %v120_v14 }
 0x223   :  { %v124_v19 = vpack.c.bf16 %v122_v18, %v122_v18 }
 0x224   :  { %v82_v20 = vadd.f32 %v80_v10, %v78_v16 }
 0x225   :  { %292 = vmatprep.mubr.bf16.mxu0 %v124_v19 }
 0x226   :  { %v121_v21 = vsel %vm26_vm0, %v53_v57, %v82_v20 }
 0x227   :  { %v123_v22 = vpack.c.bf16 %v121_v21, %v121_v21 }
 0x229   :  { %293 = vmatmul.mubr.bf16.vlgmr.msra.gmra.mxu0 %v123_v22 }
 0x2e9   :  { %v341_v23 = vpop.f32.mrf.mxu0 }
 0x2eb   :  { %v342_v24 = vpop.f32.mrf.mxu0 }
 0x2ec   :  { %v343_v25 = vadd.f32 %v342_v24, %v341_v23 }
 0x2ed   :  { %v344_v26 = vpop.f32.mrf.mxu0 }
 0x2ee   :  { %v295_v17 = vadd.f32 %v343_v25, %v308_v15 }
 0x2ef   :  { %v345_v27 = vpop.f32.mrf.mxu0 }
 0x2f0   :  { %v300_v28 = vpack.c.bf16 %v295_v17, %v295_v17 }
 0x2f2   :  { %301 = vst [vmem:[%s501_s5] sm:$0xf] %v300_v28 }

// kernel: encoder_forward.3
= control target key start
LH: loop header
LB: loop body
LE: loop exit
PB: predicated region body
PF: predicated region fallthrough
CT: control target
= control target key end

     0   :  { %s382_s20 = smov 64   ;;  %vm25_vm0 = vcmask 519168   ;;  %vm125_vm1 = vcmask 523264   ;;  %s516_s0 = inlined_call_operand.vmem [shape: bf16[4,256], index: 0, kind: input, shape index: {}]   ;;  %s517_s2 = inlined_call_operand.vmem [shape: f32[1,64], index: 2, kind: input, shape index: {}]   ;;  %s518_s1 = inlined_call_operand.vmem [shape: f32[1,64], index: 1, kind: input, shape index: {}]   ;;  %s519_s3 = inlined_call_operand.vmem [shape: bf16[256,128], index: 3, kind: input, shape index: {}]   ;;  %s520_s4 = inlined_call_operand.vmem [shape: f32[1,128], index: 4, kind: input, shape index: {}]   ;;  %s521_s5 = inlined_call_operand.vmem [shape: bf16[4,128], index: 5, kind: output, shape index: {}]  }
   0x1   :  { %v21_v0 = vld [vmem:[%s516_s0] sm:$0xf]  ;;  %v358_v36 = vld [vmem:[%s519_s3 + $0x78] sm:$0xff]   ;;  %v360_v38 = vld [vmem:[%s519_s3 + $0x70] sm:$0xff]  }
   0x2   :  { %v22_v1 = vunpack.c.l.bf16 %v21_v0  ;;  %v440_v32 = vld [vmem:[%s517_s2] ss:$0 sm:$0xff]  ;;  %v359_v37 = vld [vmem:[%s519_s3 + $0x38] sm:$0xff]   ;;  %330 = vmatprep.subr.bf16.mxu0 %v358_v36  ;;  %v361_v39 = vld [vmem:[%s519_s3 + $0x30] sm:$0xff]  }
   0x3   :  { %v448_v35 = vld [vmem:[%s518_s1] ss:$0 sm:$0xff]  ;;  %331 = vmatpush3.bf16.msra.mxu0 %v359_v37  ;;  %v362_v40 = vld [vmem:[%s519_s3 + $0x68] sm:$0xff]   ;;  %v366_v44 = vld [vmem:[%s519_s3 + $0x58] sm:$0xff]  }
   0x4   :  { %v82_v2 = vcombine.high %v22_v1, %v22_v1  ;;  %v26_v10 = vsel %vm25_vm0, %v22_v1, 0.0  ;;  %v88_v14 = vrot.slane %v22_v1, 4  ;;  %332 = vmatprep.subr.bf16.mxu0 %v360_v38  ;;  %v363_v41 = vld [vmem:[%s519_s3 + $0x28] sm:$0xff]   ;;  %v364_v42 = vld [vmem:[%s519_s3 + $0x60] sm:$0xff]   ;;  %v367_v45 = vld [vmem:[%s519_s3 + $0x18] sm:$0xff]  }
   0x5   :  { %v365_v43 = vld [vmem:[%s519_s3 + $0x20] sm:$0xff]   ;;  %v368_v46 = vld [vmem:[%s519_s3 + $0x50] sm:$0xff]   ;;  %v370_v48 = vld [vmem:[%s519_s3 + $0x48] sm:$0xff]  }
   0x6   :  { %v353_v3 = vpack.i.bf16 %v22_v1, %v82_v2  ;;  %v84_v9 = vsel %vm25_vm0, %v82_v2, 0.0  ;;  %v369_v47 = vld [vmem:[%s519_s3 + $0x10] sm:$0xff]   ;;  %v371_v50 = vld [vmem:[%s519_s3 + $0x8] sm:$0xff]   ;;  %v372_v53 = vld [vmem:[%s519_s3 + $0x40] sm:$0xff]  }
   0x7   :  { %333 = vmatpush3.bf16.msra.mxu0 %v361_v39  ;;  %v373_v54 = vld [vmem:[%s519_s3] sm:$0xff]  }
   0x8   :  { %354 = vrot.lane.b32.xlu0 %v353_v3, %s382_s20  ;;  %334 = vmatprep.subr.bf16.mxu0 %v362_v40 }
   0xb   :  { %335 = vmatpush3.bf16.msra.mxu0 %v363_v41 }
   0xc   :  { %336 = vmatprep.subr.bf16.mxu0 %v364_v42 }
   0xf   :  { %337 = vmatpush3.bf16.msra.mxu0 %v365_v43 }
  0x10   :  { %338 = vmatprep.subr.bf16.mxu0 %v366_v44 }
  0x13   :  { %339 = vmatpush3.bf16.msra.mxu0 %v367_v45 }
  0x14   :  { %340 = vmatprep.subr.bf16.mxu0 %v368_v46 }
  0x17   :  { %341 = vmatpush3.bf16.msra.mxu0 %v369_v47 }
  0x18   :  { %342 = vmatprep.subr.bf16.mxu0 %v370_v48 }
  0x1b   :  { %343 = vmatpush3.bf16.msra.mxu0 %v371_v50 }
  0x1c   :  { %344 = vmatprep.subr.bf16.mxu0 %v372_v53 }
  0x1f   :  { %345 = vmatpush3.bf16.msra.mxu0 %v373_v54 }
  0x7a   :  { %v355_v4 = vpop.permute.xlu0 %354 }
  0x7b   :  { %v356_v5 = vunpack.i.l.bf16 %v355_v4  ;;  %v357_v6 = vunpack.i.h.bf16 %v355_v4 }
  0x7d   :  { %v57_v7 = vsel %vm25_vm0, %v357_v6, 0.0  ;;  %v104_v8 = vsel %vm25_vm0, %v356_v5, 0.0  ;;  %v108_v28 = vrot.slane %v357_v6, 4 }
  0x7e   :  { %58 = vadd.xlane.f32.xlu1 %v57_v7  ;;  %105 = vadd.xlane.f32.xlu0 %v104_v8 }
  0x82   :  { %85 = vadd.xlane.f32.xlu1 %v84_v9 }
  0x86   :  { %27 = vadd.xlane.f32.xlu1 %v26_v10 }
 0x107   :  { %v59_v11 = vpop.xlane.xlu1 %58  ;;  %v106_v26 = vpop.xlane.xlu0 %105 }
 0x108   :  { %v60_v12 = vmul.f32 0.015625, %v59_v11  ;;  %v107_v27 = vmul.f32 0.015625, %v106_v26 }
 0x10a   :  { %v421_v13 = vsub.f32 %v22_v1, %v60_v12  ;;  %v110_v29 = vsub.f32 %v108_v28, %v107_v27 }
 0x10b   :  { %v86_v15 = vpop.xlane.xlu1 %85 }
 0x10c   :  { %v87_v16 = vmul.f32 0.015625, %v86_v15  ;;  %v62_v17 = vmul.f32 %v421_v13, %v421_v13  ;;  %v111_v30 = vmul.f32 %v110_v29, %v110_v29 }
 0x10e   :  { %v425_v18 = vsub.f32 %v88_v14, %v87_v16  ;;  %64 = vrot.lane.b32.xlu1 %v62_v17, %s382_s20  ;;  %v112_v31 = vsel %vm25_vm0, %v111_v30, 0.0 }
 0x10f   :  { %v28_v19 = vpop.xlane.xlu1 %27 }
 0x110   :  { %v29_v20 = vmul.f32 0.015625, %v28_v19  ;;  %v91_v21 = vmul.f32 %v425_v18, %v425_v18 }
 0x112   :  { %v430_v22 = vsub.f32 %v22_v1, %v29_v20  ;;  %v92_v23 = vsel %vm25_vm0, %v91_v21, 0.0 }
 0x113   :  { %93 = vadd.xlane.f32.xlu0 %v92_v23 }
 0x114   :  { %v31_v24 = vmul.f32 %v430_v22, %v430_v22 }
 0x116   :  { %v32_v25 = vsel %vm25_vm0, %v31_v24, 0.0 }
 0x117   :  { %33 = vadd.xlane.f32.xlu0 %v32_v25 }
 0x132   :  { %113 = vadd.xlane.f32.xlu1 %v112_v31 }
 0x143   :  { %78 = vrot.lane.b32.xlu1 %v440_v32, %s382_s20 }
 0x180   :  { %v65_v33 = vpop.permute.xlu1 %64 }
 0x181   :  { %v67_v34 = vsel %vm25_vm0, %v65_v33, 0.0 }
 0x182   :  { %68 = vadd.xlane.f32.xlu0 %v67_v34 }
 0x198   :  { %74 = vrot.lane.b32.xlu0 %v448_v35, %s382_s20 }
 0x19c   :  { %v94_v59 = vpop.xlane.xlu0 %93 }
 0x19d   :  { %v95_v0 = vmul.f32 0.015625, %v94_v59 }
 0x19f   :  { %v96_v3 = vadd.f32 1e-05, %v95_v0 }
 0x1a0   :  { %v34_v60 = vpop.xlane.xlu0 %33 }
 0x1a1   :  { %v35_v63 = vmul.f32 0.015625, %v34_v60 }
 0x1a3   :  { %v36_v2 = vadd.f32 1e-05, %v35_v63 }
 0x1bb   :  { %v114_v49 = vpop.xlane.xlu1 %113 }
 0x1bc   :  { %v115_v51 = vmul.f32 0.015625, %v114_v49 }
 0x1be   :  { %v116_v52 = vadd.f32 1e-05, %v115_v51 }
 0x1bf   :  { %v79_v12 = vpop.permute.xlu1 %78 }
 0x1c0   :  { %374 = vrsqrt.f32 %v116_v52 }
 0x1cd   :  { %v375_v55 = vpop.eup %374 }
 0x1ce   :  { %v118_v56 = vmul.f32 %v375_v55, %v110_v29 }
 0x1d0   :  { %v119_v57 = vmul.f32 %v448_v35, %v118_v56 }
 0x1d2   :  { %v120_v58 = vadd.f32 %v440_v32, %v119_v57 }
 0x1d4   :  { %122 = vrot.lane.b32.xlu0 %v120_v58, %s382_s20 }
 0x20b   :  { %v69_v61 = vpop.xlane.xlu0 %68 }
 0x20c   :  { %v70_v62 = vmul.f32 0.015625, %v69_v61 }
 0x20e   :  { %v71_v1 = vadd.f32 1e-05, %v70_v62 }
 0x20f   :  { %v75_v8 = vpop.permute.xlu0 %74 }
 0x210   :  { %376 = vrsqrt.f32 %v71_v1 }
 0x211   :  { %378 = vrsqrt.f32 %v36_v2 }
 0x212   :  { %380 = vrsqrt.f32 %v96_v3 }
 0x21d   :  { %v377_v4 = vpop.eup %376 }
 0x21e   :  { %v379_v5 = vpop.eup %378  ;;  %v73_v7 = vmul.f32 %v377_v4, %v421_v13 }
 0x21f   :  { %v381_v6 = vpop.eup %380  ;;  %v38_v9 = vmul.f32 %v379_v5, %v430_v22  ;;  %v313_v22 = vld [vmem:[%s520_s4] ss:$0 sm:$0xff] }
 0x220   :  { %v98_v10 = vmul.f32 %v381_v6, %v425_v18  ;;  %v77_v11 = vmul.f32 %v75_v8, %v73_v7 }
 0x221   :  { %v45_v14 = vmul.f32 %v448_v35, %v38_v9 }
 0x222   :  { %v99_v15 = vmul.f32 %v448_v35, %v98_v10  ;;  %v81_v16 = vadd.f32 %v79_v12, %v77_v11 }
 0x223   :  { %v52_v17 = vadd.f32 %v440_v32, %v45_v14 }
 0x224   :  { %v100_v19 = vadd.f32 %v440_v32, %v99_v15 }
 0x225   :  { %v126_v21 = vsel %vm125_vm1, %v52_v17, %v81_v16 }
 0x226   :  { %v128_v24 = vpack.c.bf16 %v126_v21, %v126_v21 }
 0x246   :  { %v123_v20 = vpop.permute.xlu0 %122 }
 0x247   :  { %v127_v13 = vsel %vm125_vm1, %v100_v19, %v123_v20 }
 0x248   :  { %v129_v23 = vpack.c.bf16 %v127_v13, %v127_v13 }
 0x24a   :  { %297 = vmatprep.mubr.bf16.mxu0 %v129_v23 }
 0x24b   :  { %298 = vmatmul.mubr.bf16.vlgmr.msra.gmra.mxu0 %v128_v24 }
 0x30b   :  { %v346_v18 = vpop.f32.mrf.mxu0 }
 0x30d   :  { %v347_v25 = vpop.f32.mrf.mxu0 }
 0x30e   :  { %v348_v26 = vadd.f32 %v347_v25, %v346_v18 }
 0x30f   :  { %v349_v27 = vpop.f32.mrf.mxu0 }
 0x310   :  { %v300_v28 = vadd.f32 %v348_v26, %v313_v22 }
 0x311   :  { %v350_v29 = vpop.f32.mrf.mxu0 }
 0x312   :  { %v305_v30 = vpack.c.bf16 %v300_v28, %v300_v28 }
 0x314   :  { %306 = vst [vmem:[%s521_s5] sm:$0x3] %v305_v30 }

</bundles_post_ra>
